<compile_context>
chip_gen: v5e
topology: v5e:2x2
jax: 0.10.0
libtpu: 0.0.40
codegen_flags: <defaults>
</compile_context>

<pallas_src>
import functools

import jax
import jax.numpy as jnp
from jax.experimental import pallas as pl
from jax.experimental.pallas import tpu as pltpu


HIDDEN = 300  # nn.Linear(feature_dim, 300) etc. -- fixed by the module spec.


def _round_up(x: int, m: int) -> int:
    return ((x + m - 1) // m) * m


def _custom_network_kernel(
    x_ref,
    w1_ref, b1_ref,            # fused layer-1: [F, 2*HP], [1, 2*HP]
    pw2_ref, pb2_ref, pw3_ref, pb3_ref,
    vw2_ref, vb2_ref, vw3_ref, vb3_ref,
    out_ref,                   # fused [bm, pi_dim + vf_dim]
):
    hp = w1_ref.shape[1] // 2          # 128-aligned hidden stride (384)
    hidden = pw2_ref.shape[0]          # 300

    def linear(a, w_ref, b_ref):
        w = w_ref[...]
        if w.dtype != jnp.float32:     # bf16 weights -> feed MXU bf16 x bf16
            a = a.astype(w.dtype)
        return jnp.dot(a, w, preferred_element_type=jnp.float32) + b_ref[...]

    x = x_ref[...]

    # ---- shared fused first layer (both heads start Linear -> ReLU) --------
    hg = jnp.maximum(linear(x, w1_ref, b1_ref), 0.0)   # [bm, 2*HP]
    h = hg[:, :hidden]                                 # policy branch
    g = hg[:, hp:hp + hidden]                          # value branch (aligned)

    # ---- policy net tail: Linear -> Tanh -> Linear -> Tanh -----------------
    h = jnp.tanh(linear(h, pw2_ref, pb2_ref))
    pi = jnp.tanh(linear(h, pw3_ref, pb3_ref))

    # ---- value net tail: Linear -> ReLU -> Linear ---------------------------
    g = jnp.maximum(linear(g, vw2_ref, vb2_ref), 0.0)
    vf = linear(g, vw3_ref, vb3_ref)

    # single lane-dense (pi_dim + vf_dim == 128) store
    out_ref[...] = jnp.concatenate([pi, vf], axis=-1)


@functools.partial(jax.jit, static_argnames=("weights_dtype", "block_m"))
def custom_network_forward(features, params, *, weights_dtype=jnp.float32,
                           block_m=256):
    """Fused actor/critic forward pass.

    features: float32 [B, feature_dim]
    params:   dict of pre-transposed weights ([in, out]) and biases ([1, out])
    Returns (latent_pi [B, pi_dim], latent_vf [B, vf_dim]) in float32.
    """
    B, F = features.shape
    pi_dim = params["pw3"].shape[1]
    vf_dim = params["vw3"].shape[1]
    out_dim = pi_dim + vf_dim
    HP = _round_up(HIDDEN, 128)        # 384: lane-aligned slot per head

    # ---- fuse the two first-layer weights into one matrix -------------------
    w1 = jnp.zeros((F, 2 * HP), jnp.float32)
    w1 = w1.at[:, :HIDDEN].set(params["pw1"])
    w1 = w1.at[:, HP:HP + HIDDEN].set(params["vw1"])
    b1 = jnp.zeros((1, 2 * HP), jnp.float32)
    b1 = b1.at[:, :HIDDEN].set(params["pb1"])
    b1 = b1.at[:, HP:HP + HIDDEN].set(params["vb1"])

    wc = lambda w: w.astype(weights_dtype)   # weights may go bf16; biases stay f32

    # ---- pad / tile the batch ------------------------------------------------
    bm = min(block_m, _round_up(B, 8))       # block rows (multiple of 8)
    Bp = _round_up(B, bm)
    x = features
    if Bp != B:
        x = jnp.pad(features, ((0, Bp - B), (0, 0)))
    grid = (Bp // bm,)

    resident = lambda shape: pl.BlockSpec(shape, lambda i: (0, 0))
    in_specs = [
        pl.BlockSpec((bm, F), lambda i: (i, 0)),          # streaming activations
        resident((F, 2 * HP)), resident((1, 2 * HP)),     # resident weights
        resident((HIDDEN, HIDDEN)), resident((1, HIDDEN)),
        resident((HIDDEN, pi_dim)), resident((1, pi_dim)),
        resident((HIDDEN, HIDDEN)), resident((1, HIDDEN)),
        resident((HIDDEN, vf_dim)), resident((1, vf_dim)),
    ]
    out_specs = pl.BlockSpec((bm, out_dim), lambda i: (i, 0))

    fused = pl.pallas_call(
        _custom_network_kernel,
        out_shape=jax.ShapeDtypeStruct((Bp, out_dim), jnp.float32),
        grid=grid,
        in_specs=in_specs,
        out_specs=out_specs,
        compiler_params=pltpu.CompilerParams(
            dimension_semantics=("parallel",)),
    )(
        x,
        wc(w1), b1,
        wc(params["pw2"]), params["pb2"], wc(params["pw3"]), params["pb3"],
        wc(params["vw2"]), params["vb2"], wc(params["vw3"]), params["vb3"],
    )

    latent_pi = fused[:B, :pi_dim]
    latent_vf = fused[:B, pi_dim:]
    return latent_pi, latent_vf


def init_params(key, feature_dim, pi_dim=64, vf_dim=64):
    """PyTorch-Linear-style init (uniform +-1/sqrt(fan_in)); weights stored
    transposed as [in, out], biases as [1, out]."""
    def linear(key, fan_in, fan_out):
        kw, kb = jax.random.split(key)
        bound = 1.0 / jnp.sqrt(float(fan_in))
        w = jax.random.uniform(kw, (fan_in, fan_out), jnp.float32, -bound, bound)
        b = jax.random.uniform(kb, (1, fan_out), jnp.float32, -bound, bound)
        return w, b

    keys = jax.random.split(key, 6)
    pw1, pb1 = linear(keys[0], feature_dim, HIDDEN)
    pw2, pb2 = linear(keys[1], HIDDEN, HIDDEN)
    pw3, pb3 = linear(keys[2], HIDDEN, pi_dim)
    vw1, vb1 = linear(keys[3], feature_dim, HIDDEN)
    vw2, vb2 = linear(keys[4], HIDDEN, HIDDEN)
    vw3, vb3 = linear(keys[5], HIDDEN, vf_dim)
    return dict(
        pw1=pw1, pb1=pb1, pw2=pw2, pb2=pb2, pw3=pw3, pb3=pb3,
        vw1=vw1, vb1=vb1, vw2=vw2, vb2=vb2, vw3=vw3, vb3=vb3,
    )


def reference_forward(features, params):
    """Pure-JAX reference mirroring the PyTorch module semantics."""
    x = features
    h = jnp.maximum(x @ params["pw1"] + params["pb1"], 0.0)
    h = jnp.tanh(h @ params["pw2"] + params["pb2"])
    pi = jnp.tanh(h @ params["pw3"] + params["pb3"])
    g = jnp.maximum(x @ params["vw1"] + params["vb1"], 0.0)
    g = jnp.maximum(g @ params["vw2"] + params["vb2"], 0.0)
    vf = g @ params["vw3"] + params["vb3"]
    return pi, vf


if __name__ == "__main__":
    key = jax.random.PRNGKey(0)
    k_small, k_big, k_params = jax.random.split(key, 3)

    feature_dim = 32
    pi_dim = 64
    vf_dim = 64
    params = init_params(k_params, feature_dim, pi_dim, vf_dim)

    # --- small batch (single grid step) -------------------------------------
    x_small = jax.random.normal(k_small, (8, feature_dim), jnp.float32)
    pi, vf = custom_network_forward(x_small, params)
    jax.block_until_ready((pi, vf))
    rpi, rvf = reference_forward(x_small, params)
    assert pi.shape == (8, pi_dim) and vf.shape == (8, vf_dim)
    assert jnp.allclose(pi, rpi, atol=1e-5, rtol=1e-5)
    assert jnp.allclose(vf, rvf, atol=1e-5, rtol=1e-5)

    # --- larger batch exercising the batch grid (2 tiles of 256) -------------
    x_big = jax.random.normal(k_big, (512, feature_dim), jnp.float32)
    pi, vf = custom_network_forward(x_big, params)
    jax.block_until_ready((pi, vf))
    rpi, rvf = reference_forward(x_big, params)
    assert jnp.allclose(pi, rpi, atol=1e-5, rtol=1e-5)
    assert jnp.allclose(vf, rvf, atol=1e-5, rtol=1e-5)

    # --- bf16-weight path (f32 accumulation / activations) -------------------
    pib, vfb = custom_network_forward(x_big, params, weights_dtype=jnp.bfloat16)
    jax.block_until_ready((pib, vfb))
    assert jnp.allclose(pib, rpi, atol=1e-1, rtol=1e-1)
    assert jnp.allclose(vfb, rvf, atol=1e-1, rtol=1e-1)

    print("KERNEL_OK")
</pallas_src>

<mosaic_0001>
module attributes {stable_mosaic.version = 11 : i64} {
  func.func @_custom_network_kernel(%arg0: i32, %arg1: memref<8x32xf32, #tpu.memory_space<vmem>>, %arg2: memref<32x768xf32, #tpu.memory_space<vmem>>, %arg3: memref<1x768xf32, #tpu.memory_space<vmem>>, %arg4: memref<300x300xf32, #tpu.memory_space<vmem>>, %arg5: memref<1x300xf32, #tpu.memory_space<vmem>>, %arg6: memref<300x64xf32, #tpu.memory_space<vmem>>, %arg7: memref<1x64xf32, #tpu.memory_space<vmem>>, %arg8: memref<300x300xf32, #tpu.memory_space<vmem>>, %arg9: memref<1x300xf32, #tpu.memory_space<vmem>>, %arg10: memref<300x64xf32, #tpu.memory_space<vmem>>, %arg11: memref<1x64xf32, #tpu.memory_space<vmem>>, %arg12: memref<8x128xf32, #tpu.memory_space<vmem>>) attributes {dimension_semantics = [#tpu.dimension_semantics<parallel>], iteration_bounds = array<i64: 1>, scalar_prefetch = 0 : i64, scratch_operands = 0 : i64, tpu.core_type = #tpu.core_type<tc>, window_params = [{transform_indices = @transform_0, window_bounds = array<i64: 8, 32>}, {pipeline_mode = #tpu.pipeline_mode<synchronous>, transform_indices = @transform_1, window_bounds = array<i64: 32, 768>}, {pipeline_mode = #tpu.pipeline_mode<synchronous>, transform_indices = @transform_2, window_bounds = array<i64: 1, 768>}, {pipeline_mode = #tpu.pipeline_mode<synchronous>, transform_indices = @transform_3, window_bounds = array<i64: 300, 300>}, {pipeline_mode = #tpu.pipeline_mode<synchronous>, transform_indices = @transform_4, window_bounds = array<i64: 1, 300>}, {pipeline_mode = #tpu.pipeline_mode<synchronous>, transform_indices = @transform_5, window_bounds = array<i64: 300, 64>}, {pipeline_mode = #tpu.pipeline_mode<synchronous>, transform_indices = @transform_6, window_bounds = array<i64: 1, 64>}, {pipeline_mode = #tpu.pipeline_mode<synchronous>, transform_indices = @transform_7, window_bounds = array<i64: 300, 300>}, {pipeline_mode = #tpu.pipeline_mode<synchronous>, transform_indices = @transform_8, window_bounds = array<i64: 1, 300>}, {pipeline_mode = #tpu.pipeline_mode<synchronous>, transform_indices = @transform_9, window_bounds = array<i64: 300, 64>}, {pipeline_mode = #tpu.pipeline_mode<synchronous>, transform_indices = @transform_10, window_bounds = array<i64: 1, 64>}, {transform_indices = @transform_11, window_bounds = array<i64: 8, 128>}]} {
    %c0 = arith.constant 0 : index
    %c0_0 = arith.constant 0 : index
    %0 = vector.load %arg1[%c0, %c0_0] : memref<8x32xf32, #tpu.memory_space<vmem>>, vector<8x32xf32>
    %c0_1 = arith.constant 0 : index
    %c0_2 = arith.constant 0 : index
    %1 = vector.load %arg2[%c0_1, %c0_2] : memref<32x768xf32, #tpu.memory_space<vmem>>, vector<32x768xf32>
    %cst = arith.constant dense<0.000000e+00> : vector<8x768xf32>
    %2 = tpu.matmul %0, %1, %cst {dimension_numbers = #tpu.dot_dimension_numbers<[1], [0], [0], [1], [0, 0, 1, 1], [], []>} : vector<8x32xf32>, vector<32x768xf32>, vector<8x768xf32> -> vector<8x768xf32>
    %c0_3 = arith.constant 0 : index
    %c0_4 = arith.constant 0 : index
    %3 = vector.load %arg3[%c0_3, %c0_4] : memref<1x768xf32, #tpu.memory_space<vmem>>, vector<1x768xf32>
    %4 = vector.broadcast %3 : vector<1x768xf32> to vector<8x768xf32>
    %5 = arith.addf %2, %4 : vector<8x768xf32>
    %cst_5 = arith.constant 0.000000e+00 : f32
    %6 = vector.broadcast %cst_5 : f32 to vector<8x768xf32>
    %7 = arith.maximumf %5, %6 : vector<8x768xf32>
    %8 = vector.extract_strided_slice %7 {offsets = [0, 0], sizes = [8, 300], strides = [1, 1]} : vector<8x768xf32> to vector<8x300xf32>
    %9 = vector.extract_strided_slice %7 {offsets = [0, 384], sizes = [8, 300], strides = [1, 1]} : vector<8x768xf32> to vector<8x300xf32>
    %c0_6 = arith.constant 0 : index
    %c0_7 = arith.constant 0 : index
    %10 = vector.load %arg4[%c0_6, %c0_7] : memref<300x300xf32, #tpu.memory_space<vmem>>, vector<300x300xf32>
    %cst_8 = arith.constant dense<0.000000e+00> : vector<8x300xf32>
    %11 = tpu.matmul %8, %10, %cst_8 {dimension_numbers = #tpu.dot_dimension_numbers<[1], [0], [0], [1], [0, 0, 1, 1], [], []>} : vector<8x300xf32>, vector<300x300xf32>, vector<8x300xf32> -> vector<8x300xf32>
    %c0_9 = arith.constant 0 : index
    %c0_10 = arith.constant 0 : index
    %12 = vector.load %arg5[%c0_9, %c0_10] : memref<1x300xf32, #tpu.memory_space<vmem>>, vector<1x300xf32>
    %13 = vector.broadcast %12 : vector<1x300xf32> to vector<8x300xf32>
    %14 = arith.addf %11, %13 : vector<8x300xf32>
    %15 = math.tanh %14 : vector<8x300xf32>
    %c0_11 = arith.constant 0 : index
    %c0_12 = arith.constant 0 : index
    %16 = vector.load %arg6[%c0_11, %c0_12] : memref<300x64xf32, #tpu.memory_space<vmem>>, vector<300x64xf32>
    %cst_13 = arith.constant dense<0.000000e+00> : vector<8x64xf32>
    %17 = tpu.matmul %15, %16, %cst_13 {dimension_numbers = #tpu.dot_dimension_numbers<[1], [0], [0], [1], [0, 0, 1, 1], [], []>} : vector<8x300xf32>, vector<300x64xf32>, vector<8x64xf32> -> vector<8x64xf32>
    %c0_14 = arith.constant 0 : index
    %c0_15 = arith.constant 0 : index
    %18 = vector.load %arg7[%c0_14, %c0_15] : memref<1x64xf32, #tpu.memory_space<vmem>>, vector<1x64xf32>
    %19 = vector.broadcast %18 : vector<1x64xf32> to vector<8x64xf32>
    %20 = arith.addf %17, %19 : vector<8x64xf32>
    %21 = math.tanh %20 : vector<8x64xf32>
    %c0_16 = arith.constant 0 : index
    %c0_17 = arith.constant 0 : index
    %22 = vector.load %arg8[%c0_16, %c0_17] : memref<300x300xf32, #tpu.memory_space<vmem>>, vector<300x300xf32>
    %cst_18 = arith.constant dense<0.000000e+00> : vector<8x300xf32>
    %23 = tpu.matmul %9, %22, %cst_18 {dimension_numbers = #tpu.dot_dimension_numbers<[1], [0], [0], [1], [0, 0, 1, 1], [], []>} : vector<8x300xf32>, vector<300x300xf32>, vector<8x300xf32> -> vector<8x300xf32>
    %c0_19 = arith.constant 0 : index
    %c0_20 = arith.constant 0 : index
    %24 = vector.load %arg9[%c0_19, %c0_20] : memref<1x300xf32, #tpu.memory_space<vmem>>, vector<1x300xf32>
    %25 = vector.broadcast %24 : vector<1x300xf32> to vector<8x300xf32>
    %26 = arith.addf %23, %25 : vector<8x300xf32>
    %cst_21 = arith.constant 0.000000e+00 : f32
    %27 = vector.broadcast %cst_21 : f32 to vector<8x300xf32>
    %28 = arith.maximumf %26, %27 : vector<8x300xf32>
    %c0_22 = arith.constant 0 : index
    %c0_23 = arith.constant 0 : index
    %29 = vector.load %arg10[%c0_22, %c0_23] : memref<300x64xf32, #tpu.memory_space<vmem>>, vector<300x64xf32>
    %cst_24 = arith.constant dense<0.000000e+00> : vector<8x64xf32>
    %30 = tpu.matmul %28, %29, %cst_24 {dimension_numbers = #tpu.dot_dimension_numbers<[1], [0], [0], [1], [0, 0, 1, 1], [], []>} : vector<8x300xf32>, vector<300x64xf32>, vector<8x64xf32> -> vector<8x64xf32>
    %c0_25 = arith.constant 0 : index
    %c0_26 = arith.constant 0 : index
    %31 = vector.load %arg11[%c0_25, %c0_26] : memref<1x64xf32, #tpu.memory_space<vmem>>, vector<1x64xf32>
    %32 = vector.broadcast %31 : vector<1x64xf32> to vector<8x64xf32>
    %33 = arith.addf %30, %32 : vector<8x64xf32>
    %34 = tpu.concatenate %21, %33 in 1 : vector<8x64xf32>, vector<8x64xf32> -> vector<8x128xf32>
    %c0_27 = arith.constant 0 : index
    %c0_28 = arith.constant 0 : index
    %35 = vector.load %arg12[%c0_27, %c0_28] : memref<8x128xf32, #tpu.memory_space<vmem>>, vector<8x128xf32>
    tpu.vector_store %arg12[%c0_27, %c0_28], %34 {strides = array<i32>} : memref<8x128xf32, #tpu.memory_space<vmem>>, vector<8x128xf32>,
    return
  }
  func.func @transform_0(%arg0: i32) -> (i32, i32) {
    %c0_i32 = arith.constant 0 : i32
    %c0_i32_0 = arith.constant 0 : i32
    return %arg0, %c0_i32 : i32, i32
  }
  func.func @transform_1(%arg0: i32) -> (i32, i32) {
    %c0_i32 = arith.constant 0 : i32
    %c0_i32_0 = arith.constant 0 : i32
    %c0_i32_1 = arith.constant 0 : i32
    return %c0_i32, %c0_i32_0 : i32, i32
  }
  func.func @transform_2(%arg0: i32) -> (i32, i32) {
    %c0_i32 = arith.constant 0 : i32
    %c0_i32_0 = arith.constant 0 : i32
    %c0_i32_1 = arith.constant 0 : i32
    return %c0_i32, %c0_i32_0 : i32, i32
  }
  func.func @transform_3(%arg0: i32) -> (i32, i32) {
    %c0_i32 = arith.constant 0 : i32
    %c0_i32_0 = arith.constant 0 : i32
    %c0_i32_1 = arith.constant 0 : i32
    return %c0_i32, %c0_i32_0 : i32, i32
  }
  func.func @transform_4(%arg0: i32) -> (i32, i32) {
    %c0_i32 = arith.constant 0 : i32
    %c0_i32_0 = arith.constant 0 : i32
    %c0_i32_1 = arith.constant 0 : i32
    return %c0_i32, %c0_i32_0 : i32, i32
  }
  func.func @transform_5(%arg0: i32) -> (i32, i32) {
    %c0_i32 = arith.constant 0 : i32
    %c0_i32_0 = arith.constant 0 : i32
    %c0_i32_1 = arith.constant 0 : i32
    return %c0_i32, %c0_i32_0 : i32, i32
  }
  func.func @transform_6(%arg0: i32) -> (i32, i32) {
    %c0_i32 = arith.constant 0 : i32
    %c0_i32_0 = arith.constant 0 : i32
    %c0_i32_1 = arith.constant 0 : i32
    return %c0_i32, %c0_i32_0 : i32, i32
  }
  func.func @transform_7(%arg0: i32) -> (i32, i32) {
    %c0_i32 = arith.constant 0 : i32
    %c0_i32_0 = arith.constant 0 : i32
    %c0_i32_1 = arith.constant 0 : i32
    return %c0_i32, %c0_i32_0 : i32, i32
  }
  func.func @transform_8(%arg0: i32) -> (i32, i32) {
    %c0_i32 = arith.constant 0 : i32
    %c0_i32_0 = arith.constant 0 : i32
    %c0_i32_1 = arith.constant 0 : i32
    return %c0_i32, %c0_i32_0 : i32, i32
  }
  func.func @transform_9(%arg0: i32) -> (i32, i32) {
    %c0_i32 = arith.constant 0 : i32
    %c0_i32_0 = arith.constant 0 : i32
    %c0_i32_1 = arith.constant 0 : i32
    return %c0_i32, %c0_i32_0 : i32, i32
  }
  func.func @transform_10(%arg0: i32) -> (i32, i32) {
    %c0_i32 = arith.constant 0 : i32
    %c0_i32_0 = arith.constant 0 : i32
    %c0_i32_1 = arith.constant 0 : i32
    return %c0_i32, %c0_i32_0 : i32, i32
  }
  func.func @transform_11(%arg0: i32) -> (i32, i32) {
    %c0_i32 = arith.constant 0 : i32
    %c0_i32_0 = arith.constant 0 : i32
    return %arg0, %c0_i32 : i32, i32
  }
}

</mosaic_0001>

<bundles_post_ra>
// kernel: custom_network_forward.1
= control target key start
LH: loop header
LB: loop body
LE: loop exit
PB: predicated region body
PF: predicated region fallthrough
CT: control target
= control target key end

     0   :  { %16 = vsyncpa [#allocation3], 0  ;;  %s1639_s0 = inlined_call_operand.vmem [shape: f32[8,32], index: 0, kind: input, shape index: {}]   ;;  %s1640_s1 = inlined_call_operand.vmem [shape: f32[32,768], index: 1, kind: input, shape index: {}]   ;;  %s1641_s2 = inlined_call_operand.vmem [shape: f32[1,768], index: 2, kind: input, shape index: {}]   ;;  %s1642_s3 = inlined_call_operand.hbm [shape: f32[300,300], index: 3, kind: input, shape index: {}]   ;;  %s1643_s4 = inlined_call_operand.vmem [shape: f32[1,300], index: 4, kind: input, shape index: {}]   ;;  %s1644_s5 = inlined_call_operand.vmem [shape: f32[300,64], index: 5, kind: input, shape index: {}]   ;;  %s1645_s6 = inlined_call_operand.vmem [shape: f32[1,64], index: 6, kind: input, shape index: {}]   ;;  %s1646_s7 = inlined_call_operand.hbm [shape: f32[300,300], index: 7, kind: input, shape index: {}]   ;;  %s1647_s8 = inlined_call_operand.vmem [shape: f32[1,300], index: 8, kind: input, shape index: {}]   ;;  %s1648_s9 = inlined_call_operand.vmem [shape: f32[300,64], index: 9, kind: input, shape index: {}]   ;;  %s1649_s10 = inlined_call_operand.vmem [shape: f32[1,64], index: 10, kind: input, shape index: {}]   ;;  %s1650_s11 = inlined_call_operand.vmem [shape: f32[8,128], index: 11, kind: output, shape index: {}]  }
   0x1   :  { %s28_s19 = sshll.u32 %s1642_s3, 4  ;;  %s29_s19 = int_to_ptr.hbm [resolvable:$true] %s28_s19 }
   0x2   :  { %17 = vsyncpa [#allocation5], 0  ;;  %s1194_s20 = smov [#allocation2]   ;;  %s47_s24 = sshll.u32 %s1646_s7, 4  ;;  %s48_s24 = int_to_ptr.hbm [resolvable:$true] %s47_s24 }
   0x3   :  { %s30_s21 = sshll.u32 %s1194_s20, 4  ;;  %s1195_s25 = smov 384   ;;  %s31_s21 = int_to_ptr.vmem [resolvable:$true] %s30_s21 }
   0x4   :  { %s1196_s26 = smov 24   ;;  %s1197_s27 = smov [#allocation4]  }
   0x5   :  { %36 = dma.hbm_to_vmem [thread:$0]  %s29_s19, 14592, %s31_s21, [#allocation3], %s1195_s25, %s1195_s25, %s1196_s26  }
   0x6   :  { %s49_s28 = sshll.u32 %s1197_s27, 4  ;;  %s50_s28 = int_to_ptr.vmem [resolvable:$true] %s49_s28 }
   0x7   :  { %55 = dma.hbm_to_vmem [thread:$0]  %s48_s24, 14592, %s50_s28, [#allocation5], %s1195_s25, %s1195_s25, %s1196_s26  }
   0x8   :  { %1190 = dma.done.wait [#allocation3], 14592  }
   0x9   :  { %1191 = vsyncadd [#allocation3], 4294952704 }
   0xa   :  { %1192 = dma.done.wait [#allocation5], 14592  }
   0xb   :  { %1193 = vsyncadd [#allocation5], 4294952704  ;;  %v89_v0 = vld [vmem:[%s1640_s1 + $0x90] sm:$0xff]  ;;  %v90_v1 = vld [vmem:[%s1640_s1 + $0x98] sm:$0xff]  ;;  %vm109_vm0 = vcmask 261120   ;;  %vm365_vm1 = vcmask 1043456  }
   0xc   :  { %v83_v2 = vld [vmem:[%s1640_s1 + $0x60] sm:$0xff]  ;;  %125 = vmatpush.msra.mxu0 %v89_v0  ;;  %145 = vmatpush.msra.mxu1 %v90_v1  ;;  %v84_v3 = vld [vmem:[%s1640_s1 + $0x68] sm:$0xff]  ;;  %v77_v4 = vld [vmem:[%s1640_s1 + $0x30] sm:$0xff]  ;;  %vm361_vm2 = vcmask 359424   ;;  %s1198_s19 = smov 64   ;;  %vm1096_vm3 = vcmask 523264  }
   0xd   :  { %v78_v5 = vld [vmem:[%s1640_s1 + $0x38] sm:$0xff]  ;;  %v71_v6 = vld [vmem:[%s1640_s1] sm:$0xff]  ;;  %v72_v7 = vld [vmem:[%s1640_s1 + $0x8] sm:$0xff] }
   0xe   :  { %126 = vmatpush.msra.mxu0 %v83_v2  ;;  %146 = vmatpush.msra.mxu1 %v84_v3  ;;  %v92_v8 = vld [vmem:[%s1640_s1 + $0xa8] sm:$0xff]  ;;  %v1295_v9 = vld [vmem:[%s1639_s0] sm:$0xff]  ;;  %v86_v11 = vld [vmem:[%s1640_s1 + $0x78] sm:$0xff] }
   0xf   :  { %v91_v10 = vld [vmem:[%s1640_s1 + $0xa0] sm:$0xff]  ;;  %185 = vmatpush.msra.mxu3 %v92_v8  ;;  %v85_v12 = vld [vmem:[%s1640_s1 + $0x70] sm:$0xff]  ;;  %v80_v13 = vld [vmem:[%s1640_s1 + $0x48] sm:$0xff] }
  0x10   :  { %127 = vmatpush.msra.mxu0 %v77_v4  ;;  %147 = vmatpush.msra.mxu1 %v78_v5  ;;  %v79_v14 = vld [vmem:[%s1640_s1 + $0x40] sm:$0xff]  ;;  %v74_v15 = vld [vmem:[%s1640_s1 + $0x18] sm:$0xff]  ;;  %v332_v16 = vld [vmem:[#allocation2 + $0x2e8] sm:$0xff] }
  0x11   :  { %186 = vmatpush.msra.mxu3 %v86_v11  ;;  %v73_v17 = vld [vmem:[%s1640_s1 + $0x10] sm:$0xff]  ;;  %v284_v19 = vld [vmem:[#allocation2 + $0x168] sm:$0xff]  ;;  %v94_v20 = vld [vmem:[%s1640_s1 + $0xb8] sm:$0xff] }
  0x12   :  { %128 = vmatpush.msra.mxu0 %v71_v6  ;;  %148 = vmatpush.msra.mxu1 %v72_v7  ;;  %v329_v18 = vld [vmem:[#allocation2 + $0x2d0] sm:$0xff]  ;;  %v326_v22 = vld [vmem:[#allocation2 + $0x2b8] sm:$0xff]  ;;  %v88_v24 = vld [vmem:[%s1640_s1 + $0x88] sm:$0xff] }
  0x13   :  { %1105 = vmatmul.msk.f32.vlgmr.msra.gmra.mxu0 %vm109_vm0, %v1295_v9  ;;  %1106 = vmatmul.msk.f32.vlgmr.msra.gmra.mxu1 %vm109_vm0, %v1295_v9  ;;  %v281_v21 = vld [vmem:[#allocation2 + $0x150] sm:$0xff]  ;;  %v278_v25 = vld [vmem:[#allocation2 + $0x138] sm:$0xff]  ;;  %v323_v26 = vld [vmem:[#allocation2 + $0x2a0] sm:$0xff] }
  0x14   :  { %165 = vmatpush.msrb.mxu1 %v91_v10  ;;  %187 = vmatpush.msra.mxu3 %v80_v13  ;;  %v93_v23 = vld [vmem:[%s1640_s1 + $0xb0] sm:$0xff]  ;;  %v87_v27 = vld [vmem:[%s1640_s1 + $0x80] sm:$0xff]  ;;  %v82_v28 = vld [vmem:[%s1640_s1 + $0x58] sm:$0xff] }
  0x15   :  { %375 = vmatpush.msra.mxu2 %v284_v19  ;;  %205 = vmatpush.msrb.mxu0 %v93_v23  ;;  %v275_v29 = vld [vmem:[#allocation2 + $0x120] sm:$0xff]  ;;  %v320_v30 = vld [vmem:[#allocation2 + $0x288] sm:$0xff]  ;;  %v81_v31 = vld [vmem:[%s1640_s1 + $0x50] sm:$0xff] }
  0x16   :  { %166 = vmatpush.msrb.mxu1 %v85_v12  ;;  %188 = vmatpush.msra.mxu3 %v74_v15  ;;  %v76_v32 = vld [vmem:[%s1640_s1 + $0x28] sm:$0xff]  ;;  %v285_v34 = vld [vmem:[#allocation2 + $0x170] sm:$0xff]  ;;  %v75_v36 = vld [vmem:[%s1640_s1 + $0x20] sm:$0xff] }
  0x17   :  { %1108 = vmatmul.msk.f32.vlgmr.msra.gmra.mxu3 %vm109_vm0, %v1295_v9  ;;  %376 = vmatpush.msra.mxu2 %v281_v21  ;;  %v272_v33 = vld [vmem:[#allocation2 + $0x108] sm:$0xff]  ;;  %v317_v35 = vld [vmem:[#allocation2 + $0x270] sm:$0xff]  ;;  %v282_v38 = vld [vmem:[#allocation2 + $0x158] sm:$0xff] }
  0x18   :  { %167 = vmatpush.msrb.mxu1 %v79_v14  ;;  %395 = vmatpush.msrb.mxu3 %v332_v16  ;;  %v269_v37 = vld [vmem:[#allocation2 + $0xf0] sm:$0xff]  ;;  %v314_v39 = vld [vmem:[#allocation2 + $0x258] sm:$0xff]  ;;  %v279_v42 = vld [vmem:[#allocation2 + $0x140] sm:$0xff] }
  0x19   :  { %377 = vmatpush.msra.mxu2 %v278_v25  ;;  %206 = vmatpush.msrb.mxu0 %v87_v27  ;;  %v350_v40 = vld [vmem:[#allocation2 + $0x378] sm:$0xf]  ;;  %v311_v43 = vld [vmem:[#allocation2 + $0x240] sm:$0xff]  ;;  %v276_v45 = vld [vmem:[#allocation2 + $0x128] sm:$0xff] }
  0x1a   :  { %168 = vmatpush.msrb.mxu1 %v73_v17  ;;  %396 = vmatpush.msrb.mxu3 %v329_v18  ;;  %v266_v41 = vld [vmem:[#allocation2 + $0xd8] sm:$0xff]  ;;  %v347_v44 = vld [vmem:[#allocation2 + $0x360] sm:$0xff]  ;;  %v308_v46 = vld [vmem:[#allocation2 + $0x228] sm:$0xff] }
  0x1b   :  { %1107 = vmatmul.msk.f32.vlgmr.msrb.gmra.mxu1 %vm109_vm0, %v1295_v9  ;;  %378 = vmatpush.msra.mxu2 %v275_v29  ;;  %v263_v47 = vld [vmem:[#allocation2 + $0xc0] sm:$0xff]  ;;  %v344_v48 = vld [vmem:[#allocation2 + $0x348] sm:$0xff]  ;;  %v273_v49 = vld [vmem:[#allocation2 + $0x110] sm:$0xff] }
  0x1c   :  { %225 = vmatpush.msra.mxu1 %v94_v20  ;;  %397 = vmatpush.msrb.mxu3 %v326_v22  ;;  %v305_v50 = vld [vmem:[#allocation2 + $0x210] sm:$0xff]  ;;  %v260_v51 = vld [vmem:[#allocation2 + $0xa8] sm:$0xff]  ;;  %v270_v53 = vld [vmem:[#allocation2 + $0xf8] sm:$0xff] }
  0x1d   :  { %207 = vmatpush.msrb.mxu0 %v81_v31  ;;  %379 = vmatpush.msra.mxu2 %v272_v33  ;;  %v341_v52 = vld [vmem:[#allocation2 + $0x330] sm:$0xff]  ;;  %v302_v54 = vld [vmem:[#allocation2 + $0x1f8] sm:$0xff]  ;;  %v267_v57 = vld [vmem:[#allocation2 + $0xe0] sm:$0xff] }
  0x1e   :  { %226 = vmatpush.msra.mxu1 %v88_v24  ;;  %398 = vmatpush.msrb.mxu3 %v323_v26  ;;  %v257_v55 = vld [vmem:[#allocation2 + $0x90] sm:$0xff]  ;;  %v338_v56 = vld [vmem:[#allocation2 + $0x318] sm:$0xff]  ;;  %v299_v58 = vld [vmem:[#allocation2 + $0x1e0] sm:$0xff] }
  0x1f   :  { %208 = vmatpush.msrb.mxu0 %v75_v36  ;;  %380 = vmatpush.msra.mxu2 %v269_v37  ;;  %v254_v59 = vld [vmem:[#allocation2 + $0x78] sm:$0xff]  ;;  %v335_v60 = vld [vmem:[#allocation2 + $0x300] sm:$0xff]  ;;  %v264_v61 = vld [vmem:[#allocation2 + $0xc8] sm:$0xff] }
  0x20   :  { %227 = vmatpush.msra.mxu1 %v82_v28  ;;  %399 = vmatpush.msrb.mxu3 %v320_v30  ;;  %v296_v62 = vld [vmem:[#allocation2 + $0x1c8] sm:$0xff]  ;;  %v251_v63 = vld [vmem:[#allocation2 + $0x60] sm:$0xff]  ;;  %v261_v0 = vld [vmem:[#allocation2 + $0xb0] sm:$0xff] }
  0x21   :  { %1111 = vmatpush.msk.msra.mxu0 %vm365_vm1, %v350_v40  ;;  %381 = vmatpush.msra.mxu2 %v266_v41  ;;  %v293_v1 = vld [vmem:[#allocation2 + $0x1b0] sm:$0xff]  ;;  %v248_v3 = vld [vmem:[#allocation2 + $0x48] sm:$0xff]  ;;  %v258_v4 = vld [vmem:[#allocation2 + $0x98] sm:$0xff] }
  0x22   :  { %228 = vmatpush.msra.mxu1 %v76_v32  ;;  %400 = vmatpush.msrb.mxu3 %v317_v35  ;;  %v333_v2 = vld [vmem:[#allocation2 + $0x2f0] sm:$0xff]  ;;  %v290_v5 = vld [vmem:[#allocation2 + $0x198] sm:$0xff]  ;;  %v255_v8 = vld [vmem:[#allocation2 + $0x80] sm:$0xff] }
  0x23   :  { %426 = vmatpush.msra.mxu0 %v347_v44  ;;  %1110 = vmatmul.msk.f32.vlgmr.msra.gmra.mxu1 %vm109_vm0, %v1295_v9  ;;  %v330_v6 = vld [vmem:[#allocation2 + $0x2d8] sm:$0xff]  ;;  %v245_v7 = vld [vmem:[#allocation2 + $0x30] sm:$0xff]  ;;  %v287_v10 = vld [vmem:[#allocation2 + $0x180] sm:$0xff] }
  0x24   :  { %435 = vmatpush.msrb.mxu1 %v285_v34  ;;  %401 = vmatpush.msrb.mxu3 %v314_v39  ;;  %v286_v11 = vld [vmem:[#allocation2 + $0x178] sm:$0xff]  ;;  %v327_v12 = vld [vmem:[#allocation2 + $0x2c0] sm:$0xff]  ;;  %v252_v13 = vld [vmem:[#allocation2 + $0x68] sm:$0xff] }
  0x25   :  { %382 = vmatpush.msra.mxu2 %v263_v47  ;;  %427 = vmatpush.msra.mxu0 %v344_v48  ;;  %v242_v14 = vld [vmem:[#allocation2 + $0x18] sm:$0xff]  ;;  %v324_v15 = vld [vmem:[#allocation2 + $0x2a8] sm:$0xff]  ;;  %v249_v16 = vld [vmem:[#allocation2 + $0x50] sm:$0xff] }
  0x26   :  { %436 = vmatpush.msrb.mxu1 %v282_v38  ;;  %402 = vmatpush.msrb.mxu3 %v311_v43  ;;  %v239_v17 = vld [vmem:[#allocation2] sm:$0xff]  ;;  %v280_v18 = vld [vmem:[#allocation2 + $0x148] sm:$0xff]  ;;  %v321_v19 = vld [vmem:[#allocation2 + $0x290] sm:$0xff] }
  0x27   :  { %383 = vmatpush.msra.mxu2 %v260_v51  ;;  %428 = vmatpush.msra.mxu0 %v341_v52  ;;  %v246_v20 = vld [vmem:[#allocation2 + $0x38] sm:$0xff]  ;;  %v351_v21 = vld [vmem:[#allocation2 + $0x380] sm:$0xf]  ;;  %v277_v22 = vld [vmem:[#allocation2 + $0x130] sm:$0xff] }
  0x28   :  { %437 = vmatpush.msrb.mxu1 %v279_v42  ;;  %403 = vmatpush.msrb.mxu3 %v308_v46  ;;  %v243_v23 = vld [vmem:[#allocation2 + $0x20] sm:$0xff]  ;;  %v274_v24 = vld [vmem:[#allocation2 + $0x118] sm:$0xff]  ;;  %v240_v25 = vld [vmem:[#allocation2 + $0x8] sm:$0xff] }
  0x29   :  { %384 = vmatpush.msra.mxu2 %v257_v55  ;;  %429 = vmatpush.msra.mxu0 %v338_v56  ;;  %v334_v26 = vld [vmem:[#allocation2 + $0x2f8] sm:$0xff]  ;;  %v271_v27 = vld [vmem:[#allocation2 + $0x100] sm:$0xff]  ;;  %v268_v29 = vld [vmem:[#allocation2 + $0xe8] sm:$0xff] }
  0x2a   :  { %438 = vmatpush.msrb.mxu1 %v276_v45  ;;  %404 = vmatpush.msrb.mxu3 %v305_v50  ;;  %v331_v28 = vld [vmem:[#allocation2 + $0x2e0] sm:$0xff]  ;;  %v328_v30 = vld [vmem:[#allocation2 + $0x2c8] sm:$0xff]  ;;  %v265_v31 = vld [vmem:[#allocation2 + $0xd0] sm:$0xff] }
  0x2b   :  { %385 = vmatpush.msra.mxu2 %v254_v59  ;;  %430 = vmatpush.msra.mxu0 %v335_v60  ;;  %v325_v32 = vld [vmem:[#allocation2 + $0x2b0] sm:$0xff]  ;;  %v262_v33 = vld [vmem:[#allocation2 + $0xb8] sm:$0xff]  ;;  %v319_v35 = vld [vmem:[#allocation2 + $0x280] sm:$0xff] }
  0x2c   :  { %439 = vmatpush.msrb.mxu1 %v273_v49  ;;  %405 = vmatpush.msrb.mxu3 %v302_v54  ;;  %v322_v34 = vld [vmem:[#allocation2 + $0x298] sm:$0xff]  ;;  %v316_v36 = vld [vmem:[#allocation2 + $0x268] sm:$0xff]  ;;  %v313_v37 = vld [vmem:[#allocation2 + $0x250] sm:$0xff] }
  0x2d   :  { %1109 = vmatmul.msk.f32.vlgmr.msrb.gmra.mxu0 %vm109_vm0, %v1295_v9  ;;  %386 = vmatpush.msra.mxu2 %v251_v63  ;;  %v283_v9 = vld [vmem:[#allocation2 + $0x160] sm:$0xff]  ;;  %v310_v38 = vld [vmem:[#allocation2 + $0x238] sm:$0xff]  ;;  %v348_v42 = vld [vmem:[#allocation2 + $0x368] sm:$0xff] }
  0x2e   :  { %440 = vmatpush.msrb.mxu1 %v270_v53  ;;  %406 = vmatpush.msrb.mxu3 %v299_v58  ;;  %v318_v39 = vld [vmem:[#allocation2 + $0x278] sm:$0xff]  ;;  %v259_v40 = vld [vmem:[#allocation2 + $0xa0] sm:$0xff]  ;;  %v256_v44 = vld [vmem:[#allocation2 + $0x88] sm:$0xff] }
  0x2f   :  { %455 = vmatpush.msrb.mxu0 %v333_v2  ;;  %387 = vmatpush.msra.mxu2 %v248_v3  ;;  %v307_v41 = vld [vmem:[#allocation2 + $0x220] sm:$0xff]  ;;  %v304_v45 = vld [vmem:[#allocation2 + $0x208] sm:$0xff]  ;;  %v345_v46 = vld [vmem:[#allocation2 + $0x350] sm:$0xff] }
  0x30   :  { %441 = vmatpush.msrb.mxu1 %v267_v57  ;;  %407 = vmatpush.msrb.mxu3 %v296_v62  ;;  %v315_v43 = vld [vmem:[#allocation2 + $0x260] sm:$0xff]  ;;  %v312_v47 = vld [vmem:[#allocation2 + $0x248] sm:$0xff]  ;;  %v253_v48 = vld [vmem:[#allocation2 + $0x70] sm:$0xff] }
  0x31   :  { %456 = vmatpush.msrb.mxu0 %v330_v6  ;;  %388 = vmatpush.msra.mxu2 %v245_v7  ;;  %v301_v49 = vld [vmem:[#allocation2 + $0x1f0] sm:$0xff]  ;;  %v342_v50 = vld [vmem:[#allocation2 + $0x338] sm:$0xff]  ;;  %v339_v54 = vld [vmem:[#allocation2 + $0x320] sm:$0xff] }
  0x32   :  { %442 = vmatpush.msrb.mxu1 %v264_v61  ;;  %408 = vmatpush.msrb.mxu3 %v293_v1  ;;  %v309_v51 = vld [vmem:[#allocation2 + $0x230] sm:$0xff]  ;;  %v250_v52 = vld [vmem:[#allocation2 + $0x58] sm:$0xff]  ;;  %v247_v56 = vld [vmem:[#allocation2 + $0x40] sm:$0xff] }
  0x33   :  { %457 = vmatpush.msrb.mxu0 %v327_v12  ;;  %389 = vmatpush.msra.mxu2 %v242_v14  ;;  %v298_v53 = vld [vmem:[#allocation2 + $0x1d8] sm:$0xff]  ;;  %v295_v57 = vld [vmem:[#allocation2 + $0x1c0] sm:$0xff]  ;;  %v336_v58 = vld [vmem:[#allocation2 + $0x308] sm:$0xff] }
  0x34   :  { %443 = vmatpush.msrb.mxu1 %v261_v0  ;;  %409 = vmatpush.msrb.mxu3 %v290_v5  ;;  %v306_v55 = vld [vmem:[#allocation2 + $0x218] sm:$0xff]  ;;  %v303_v59 = vld [vmem:[#allocation2 + $0x200] sm:$0xff]  ;;  %v244_v60 = vld [vmem:[#allocation2 + $0x28] sm:$0xff] }
  0x35   :  { %458 = vmatpush.msrb.mxu0 %v324_v15  ;;  %390 = vmatpush.msra.mxu2 %v239_v17  ;;  %v292_v61 = vld [vmem:[#allocation2 + $0x1a8] sm:$0xff]  ;;  %v241_v63 = vld [vmem:[#allocation2 + $0x10] sm:$0xff]  ;;  %v294_v2 = vld [vmem:[#allocation2 + $0x1b8] sm:$0xff] }
  0x36   :  { %444 = vmatpush.msrb.mxu1 %v258_v4  ;;  %410 = vmatpush.msrb.mxu3 %v287_v10  ;;  %v300_v62 = vld [vmem:[#allocation2 + $0x1e8] sm:$0xff]  ;;  %v289_v0 = vld [vmem:[#allocation2 + $0x190] sm:$0xff]  ;;  %v291_v3 = vld [vmem:[#allocation2 + $0x1a0] sm:$0xff] }
  0x37   :  { %459 = vmatpush.msrb.mxu0 %v321_v19  ;;  %1113 = vmatpush.msk.msrb.mxu2 %vm365_vm1, %v351_v21  ;;  %v297_v1 = vld [vmem:[#allocation2 + $0x1d0] sm:$0xff]  ;;  %v288_v4 = vld [vmem:[#allocation2 + $0x188] sm:$0xff]  ;;  %v1359_v5 = vld [vmem:[%s1641_s2] sm:$0x3f] }
  0x38   :  { %445 = vmatpush.msrb.mxu1 %v255_v8  ;;  %495 = vmatpush.msra.mxu3 %v286_v11  ;;  %v97_v6 = vperm.slane %v1359_v5, 0  ;;  %v98_v7 = vperm.slane %v1359_v5, 1  ;;  %v712_v15 = vld [vmem:[#allocation4 + $0x168] sm:$0xff]  ;;  %v349_v17 = vld [vmem:[#allocation2 + $0x370] sm:$0xff]  ;;  %v706_v21 = vld [vmem:[#allocation4 + $0x138] sm:$0xff] }
  0x39   :  { %460 = vmatpush.msrb.mxu0 %v318_v39  ;;  %486 = vmatpush.msrb.mxu2 %v348_v42  ;;  %v346_v19 = vld [vmem:[#allocation2 + $0x358] sm:$0xff]  ;;  %v586_v39 = vld [vmem:[%s1644_s5 + $0xe0] sm:$0xff] }
  0x3a   :  { %446 = vmatpush.msrb.mxu1 %v252_v13  ;;  %496 = vmatpush.msra.mxu3 %v283_v9  ;;  %v352_v9 = vld [vmem:[#allocation2 + $0x388] sm:$0xf]  ;;  %v585_v42 = vld [vmem:[%s1644_s5 + $0xd8] sm:$0xff] }
  0x3b   :  { %461 = vmatpush.msrb.mxu0 %v315_v43  ;;  %487 = vmatpush.msrb.mxu2 %v345_v46  ;;  %v568_v43 = vld [vmem:[%s1644_s5 + $0x50] sm:$0xff]  ;;  %v567_v46 = vld [vmem:[%s1644_s5 + $0x48] sm:$0xff] }
  0x3c   :  { %447 = vmatpush.msrb.mxu1 %v249_v16  ;;  %497 = vmatpush.msra.mxu3 %v280_v18  ;;  %v99_v16 = vperm.slane %v1359_v5, 2  ;;  %v709_v18 = vld [vmem:[#allocation4 + $0x150] sm:$0xff] }
  0x3d   :  { %462 = vmatpush.msrb.mxu0 %v312_v47  ;;  %488 = vmatpush.msrb.mxu2 %v342_v50  ;;  %v595_v47 = vld [vmem:[%s1644_s5 + $0x128] sm:$0xf]  ;;  %v566_v50 = vld [vmem:[%s1644_s5 + $0x40] sm:$0xff] }
  0x3e   :  { %448 = vmatpush.msrb.mxu1 %v246_v20  ;;  %498 = vmatpush.msra.mxu3 %v277_v22 }
  0x3f   :  { %463 = vmatpush.msrb.mxu0 %v309_v51  ;;  %489 = vmatpush.msrb.mxu2 %v339_v54  ;;  %v594_v51 = vld [vmem:[%s1644_s5 + $0x120] sm:$0xff]  ;;  %v100_v54 = vperm.slane %v1359_v5, 3 }
  0x40   :  { %449 = vmatpush.msrb.mxu1 %v243_v23  ;;  %499 = vmatpush.msra.mxu3 %v274_v24  ;;  %v343_v23 = vld [vmem:[#allocation2 + $0x340] sm:$0xff] }
  0x41   :  { %464 = vmatpush.msrb.mxu0 %v306_v55  ;;  %490 = vmatpush.msrb.mxu2 %v336_v58  ;;  %v565_v55 = vld [vmem:[%s1644_s5 + $0x38] sm:$0xff] }
  0x42   :  { %450 = vmatpush.msrb.mxu1 %v240_v25  ;;  %500 = vmatpush.msra.mxu3 %v271_v27  ;;  %v340_v25 = vld [vmem:[#allocation2 + $0x328] sm:$0xff]  ;;  %v337_v27 = vld [vmem:[#allocation2 + $0x310] sm:$0xff] }
  0x43   :  { %465 = vmatpush.msrb.mxu0 %v303_v59  ;;  %v581_v59 = vld [vmem:[%s1644_s5 + $0xb8] sm:$0xff] }
  0x44   :  { %515 = vmatpush.msra.mxu1 %v334_v26  ;;  %501 = vmatpush.msra.mxu3 %v268_v29  ;;  %v703_v26 = vld [vmem:[#allocation4 + $0x120] sm:$0xff]  ;;  %v589_v29 = vld [vmem:[%s1644_s5 + $0xf8] sm:$0xff] }
  0x45   :  { %466 = vmatpush.msrb.mxu0 %v300_v62  ;;  %v673_v62 = vld [vmem:[#allocation4 + $0x30] sm:$0xff] }
  0x46   :  { %516 = vmatpush.msra.mxu1 %v331_v28  ;;  %502 = vmatpush.msra.mxu3 %v265_v31  ;;  %v700_v28 = vld [vmem:[#allocation4 + $0x108] sm:$0xff]  ;;  %v697_v31 = vld [vmem:[#allocation4 + $0xf0] sm:$0xff] }
  0x47   :  { %467 = vmatpush.msrb.mxu0 %v297_v1  ;;  %v563_v1 = vld [vmem:[%s1644_s5 + $0x28] sm:$0xff] }
  0x48   :  { %517 = vmatpush.msra.mxu1 %v328_v30  ;;  %503 = vmatpush.msra.mxu3 %v262_v33  ;;  %v573_v30 = vld [vmem:[%s1644_s5 + $0x78] sm:$0xff]  ;;  %v572_v33 = vld [vmem:[%s1644_s5 + $0x70] sm:$0xff] }
  0x49   :  { %468 = vmatpush.msrb.mxu0 %v294_v2  ;;  %v591_v2 = vld [vmem:[%s1644_s5 + $0x108] sm:$0xff] }
  0x4a   :  { %518 = vmatpush.msra.mxu1 %v325_v32  ;;  %504 = vmatpush.msra.mxu3 %v259_v40  ;;  %v588_v32 = vld [vmem:[%s1644_s5 + $0xf0] sm:$0xff]  ;;  %v569_v40 = vld [vmem:[%s1644_s5 + $0x58] sm:$0xff] }
  0x4b   :  { %469 = vmatpush.msrb.mxu0 %v291_v3  ;;  %v670_v3 = vld [vmem:[#allocation4 + $0x18] sm:$0xff] }
  0x4c   :  { %519 = vmatpush.msra.mxu1 %v322_v34  ;;  %505 = vmatpush.msra.mxu3 %v256_v44  ;;  %v694_v34 = vld [vmem:[#allocation4 + $0xd8] sm:$0xff]  ;;  %v685_v44 = vld [vmem:[#allocation4 + $0x90] sm:$0xff] }
  0x4d   :  { %470 = vmatpush.msrb.mxu0 %v288_v4  ;;  %v579_v4 = vld [vmem:[%s1644_s5 + $0xa8] sm:$0xff] }
  0x4e   :  { %520 = vmatpush.msra.mxu1 %v319_v35  ;;  %506 = vmatpush.msra.mxu3 %v253_v48  ;;  %v587_v35 = vld [vmem:[%s1644_s5 + $0xe8] sm:$0xff] }
  0x4f   :  { %v682_v48 = vld [vmem:[#allocation4 + $0x78] sm:$0xff] }
  0x50   :  { %521 = vmatpush.msra.mxu1 %v316_v36  ;;  %507 = vmatpush.msra.mxu3 %v250_v52  ;;  %v571_v36 = vld [vmem:[%s1644_s5 + $0x68] sm:$0xff]  ;;  %v679_v52 = vld [vmem:[#allocation4 + $0x60] sm:$0xff] }
  0x52   :  { %522 = vmatpush.msra.mxu1 %v313_v37  ;;  %508 = vmatpush.msra.mxu3 %v247_v56  ;;  %v570_v37 = vld [vmem:[%s1644_s5 + $0x60] sm:$0xff]  ;;  %v593_v56 = vld [vmem:[%s1644_s5 + $0x118] sm:$0xff] }
  0x54   :  { %523 = vmatpush.msra.mxu1 %v310_v38  ;;  %509 = vmatpush.msra.mxu3 %v244_v60  ;;  %v691_v38 = vld [vmem:[#allocation4 + $0xc0] sm:$0xff] }
  0x55   :  { %v564_v60 = vld [vmem:[%s1644_s5 + $0x30] sm:$0xff] }
  0x56   :  { %524 = vmatpush.msra.mxu1 %v307_v41  ;;  %510 = vmatpush.msra.mxu3 %v241_v63  ;;  %v688_v41 = vld [vmem:[#allocation4 + $0xa8] sm:$0xff]  ;;  %v580_v63 = vld [vmem:[%s1644_s5 + $0xb0] sm:$0xff] }
  0x58   :  { %525 = vmatpush.msra.mxu1 %v304_v45  ;;  %v584_v45 = vld [vmem:[%s1644_s5 + $0xd0] sm:$0xff] }
  0x5a   :  { %526 = vmatpush.msra.mxu1 %v301_v49  ;;  %v583_v49 = vld [vmem:[%s1644_s5 + $0xc8] sm:$0xff] }
  0x5c   :  { %527 = vmatpush.msra.mxu1 %v298_v53  ;;  %v582_v53 = vld [vmem:[%s1644_s5 + $0xc0] sm:$0xff] }
  0x5e   :  { %528 = vmatpush.msra.mxu1 %v295_v57  ;;  %v676_v57 = vld [vmem:[#allocation4 + $0x48] sm:$0xff] }
  0x60   :  { %529 = vmatpush.msra.mxu1 %v292_v61  ;;  %v592_v61 = vld [vmem:[%s1644_s5 + $0x110] sm:$0xff] }
  0x62   :  { %530 = vmatpush.msra.mxu1 %v289_v0 }
  0x90   :  { %v130_v8 = vpop.f32.mrf.mxu0  ;;  %v150_v10 = vpop.f32.mrf.mxu1 }
  0x91   :  { %v131_v11 = vadd.f32 %v130_v8, %v97_v6  ;;  %v151_v12 = vadd.f32 %v150_v10, %v98_v7  ;;  %v667_v6 = vld [vmem:[#allocation4] sm:$0xff]  ;;  %v578_v7 = vld [vmem:[%s1644_s5 + $0xa0] sm:$0xff] }
  0x92   :  { %v779_v8 = vld [vmem:[#allocation4 + $0x380] sm:$0xf] }
  0x93   :  { %v233_v13 = vmax.f32 %v131_v11, 0.0  ;;  %v234_v14 = vmax.f32 %v151_v12, 0.0  ;;  %v577_v11 = vld [vmem:[%s1644_s5 + $0x98] sm:$0xff] }
  0x94   :  { %v776_v12 = vld [vmem:[#allocation4 + $0x368] sm:$0xff] }
  0x95   :  { %391 = vmatmul.f32.vlgmr.msra.gmra.mxu2 %v233_v13  ;;  %411 = vmatmul.f32.vlgmr.msrb.gmra.mxu3 %v234_v14 }
  0x96   :  { %451 = vmatmul.f32.vlgmr.msrb.gmra.mxu1 %v233_v13  ;;  %1115 = vmatpush.msk.msra.mxu2 %vm365_vm1, %v352_v9  ;;  %v773_v9 = vld [vmem:[#allocation4 + $0x350] sm:$0xff] }
  0x97   :  { %801 = vmatpush.msrb.mxu1 %v712_v15  ;;  %1117 = vmatpush.msk.msrb.mxu3 %vm365_vm1, %v595_v47  ;;  %v726_v47 = vld [vmem:[#allocation4 + $0x1d8] sm:$0xff] }
  0x98   :  { %v170_v20 = vpop.f32.mrf.mxu1  ;;  %546 = vmatpush.msra.mxu2 %v349_v17  ;;  %v770_v17 = vld [vmem:[#allocation4 + $0x338] sm:$0xff] }
  0x99   :  { %v171_v22 = vadd.f32 %v170_v20, %v99_v16  ;;  %802 = vmatpush.msrb.mxu1 %v709_v18  ;;  %657 = vmatpush.msrb.mxu3 %v594_v51  ;;  %v575_v16 = vld [vmem:[%s1644_s5 + $0x88] sm:$0xff]  ;;  %v764_v20 = vld [vmem:[#allocation4 + $0x308] sm:$0xff] }
  0x9a   :  { %547 = vmatpush.msra.mxu2 %v346_v19  ;;  %v190_v58 = vpop.f32.mrf.mxu3  ;;  %v767_v19 = vld [vmem:[#allocation4 + $0x320] sm:$0xff]  ;;  %v704_v51 = vld [vmem:[#allocation4 + $0x128] sm:$0xff] }
  0x9b   :  { %v235_v24 = vmax.f32 %v171_v22, 0.0  ;;  %803 = vmatpush.msrb.mxu1 %v706_v21  ;;  %658 = vmatpush.msrb.mxu3 %v593_v56  ;;  %v191_v0 = vadd.f32 %v190_v58, %v100_v54  ;;  %v762_v21 = vld [vmem:[#allocation4 + $0x2f8] sm:$0xff]  ;;  %v720_v56 = vld [vmem:[#allocation4 + $0x1a8] sm:$0xff]  ;;  %v775_v58 = vld [vmem:[#allocation4 + $0x360] sm:$0xff] }
  0x9c   :  { %548 = vmatpush.msra.mxu2 %v343_v23  ;;  %v759_v23 = vld [vmem:[#allocation4 + $0x2e0] sm:$0xff]  ;;  %v778_v54 = vld [vmem:[#allocation4 + $0x378] sm:$0xf] }
  0x9d   :  { %1112 = vmatmul.msk.f32.vlgmr.msra.gmra.mxu0 %vm361_vm2, %v235_v24  ;;  %1114 = vmatmul.msk.f32.vlgmr.msrb.gmra.mxu2 %vm361_vm2, %v235_v24  ;;  %v1454_v10 = vmax.f32 %v191_v0, 0.0  ;;  %v695_v0 = vld [vmem:[#allocation4 + $0xe0] sm:$0xff] }
  0x9e   :  { %511 = vmatmul.f32.vlgmr.msra.gmra.mxu3 %v233_v13  ;;  %531 = vmatmul.f32.vlgmr.msra.gmra.mxu1 %v234_v14  ;;  %v102_v13 = vperm.slane %v1359_v5, 5 }
  0x9f   :  { %549 = vmatpush.msra.mxu2 %v340_v25  ;;  %804 = vmatpush.msrb.mxu1 %v703_v26  ;;  %v753_v25 = vld [vmem:[#allocation4 + $0x2b0] sm:$0xff]  ;;  %v750_v26 = vld [vmem:[#allocation4 + $0x298] sm:$0xff] }
  0xa0   :  { %606 = vmatpush.msra.mxu0 %v573_v30  ;;  %659 = vmatpush.msrb.mxu3 %v592_v61  ;;  %v230_v15 = vpop.f32.mrf.mxu1  ;;  %v738_v30 = vld [vmem:[#allocation4 + $0x238] sm:$0xff]  ;;  %v717_v61 = vld [vmem:[#allocation4 + $0x190] sm:$0xff] }
  0xa1   :  { %550 = vmatpush.msra.mxu2 %v337_v27  ;;  %805 = vmatpush.msrb.mxu1 %v700_v28  ;;  %v231_v18 = vadd.f32 %v230_v15, %v102_v13  ;;  %v747_v27 = vld [vmem:[#allocation4 + $0x280] sm:$0xff]  ;;  %v744_v28 = vld [vmem:[#allocation4 + $0x268] sm:$0xff]  ;;  %v730_v13 = vld [vmem:[#allocation4 + $0x1f8] sm:$0xff] }
  0xa2   :  { %607 = vmatpush.msra.mxu0 %v572_v33  ;;  %660 = vmatpush.msrb.mxu3 %v591_v2  ;;  %v735_v33 = vld [vmem:[#allocation4 + $0x220] sm:$0xff]  ;;  %v769_v2 = vld [vmem:[#allocation4 + $0x330] sm:$0xff]  ;;  %v680_v15 = vld [vmem:[#allocation4 + $0x68] sm:$0xff] }
  0xa3   :  { %626 = vmatpush.msrb.mxu2 %v589_v29  ;;  %806 = vmatpush.msrb.mxu1 %v697_v31  ;;  %v1468_v22 = vmax.f32 %v231_v18, 0.0  ;;  %v741_v29 = vld [vmem:[#allocation4 + $0x250] sm:$0xff] }
  0xa4   :  { %608 = vmatpush.msra.mxu0 %v571_v36  ;;  %v562_v31 = vld [vmem:[%s1644_s5 + $0x20] sm:$0xff]  ;;  %v561_v36 = vld [vmem:[%s1644_s5 + $0x18] sm:$0xff] }
  0xa5   :  { %627 = vmatpush.msrb.mxu2 %v588_v32  ;;  %471 = vmatmul.f32.vlgmr.msrb.gmra.mxu0 %v234_v14  ;;  %v576_v14 = vld [vmem:[%s1644_s5 + $0x90] sm:$0xff]  ;;  %v590_v32 = vld [vmem:[%s1644_s5 + $0x100] sm:$0xff] }
  0xa6   :  { %1116 = vmatmul.msk.f32.vlgmr.msra.gmra.mxu2 %vm361_vm2, %v235_v24  ;;  %807 = vmatpush.msrb.mxu1 %v694_v34  ;;  %v756_v24 = vld [vmem:[#allocation4 + $0x2c8] sm:$0xff]  ;;  %v574_v34 = vld [vmem:[%s1644_s5 + $0x80] sm:$0xff] }
  0xa7   :  { %628 = vmatpush.msrb.mxu2 %v587_v35  ;;  %609 = vmatpush.msra.mxu0 %v570_v37  ;;  %v760_v35 = vld [vmem:[#allocation4 + $0x2e8] sm:$0xff]  ;;  %v713_v37 = vld [vmem:[#allocation4 + $0x170] sm:$0xff] }
  0xa8   :  { %808 = vmatpush.msrb.mxu1 %v691_v38  ;;  %661 = vmatpush.msrb.mxu3 %v590_v32  ;;  %v732_v38 = vld [vmem:[#allocation4 + $0x208] sm:$0xff]  ;;  %v721_v18 = vld [vmem:[#allocation4 + $0x1b0] sm:$0xff] }
  0xa9   :  { %629 = vmatpush.msrb.mxu2 %v586_v39  ;;  %610 = vmatpush.msra.mxu0 %v569_v40  ;;  %v757_v39 = vld [vmem:[#allocation4 + $0x2d0] sm:$0xff]  ;;  %v560_v40 = vld [vmem:[%s1644_s5 + $0x10] sm:$0xff] }
  0xaa   :  { %809 = vmatpush.msrb.mxu1 %v688_v41  ;;  %821 = vmatpush.msra.mxu3 %v760_v35  ;;  %v710_v41 = vld [vmem:[#allocation4 + $0x158] sm:$0xff] }
  0xab   :  { %630 = vmatpush.msrb.mxu2 %v585_v42  ;;  %611 = vmatpush.msra.mxu0 %v568_v43  ;;  %v101_v42 = vperm.slane %v1359_v5, 4  ;;  %v729_v43 = vld [vmem:[#allocation4 + $0x1f0] sm:$0xff] }
  0xac   :  { %810 = vmatpush.msrb.mxu1 %v685_v44  ;;  %v754_v44 = vld [vmem:[#allocation4 + $0x2b8] sm:$0xff]  ;;  %822 = vmatpush.msra.mxu3 %v757_v39  ;;  %v558_v5 = vld [vmem:[%s1644_s5] sm:$0xff] }
  0xad   :  { %631 = vmatpush.msrb.mxu2 %v584_v45  ;;  %612 = vmatpush.msra.mxu0 %v567_v46  ;;  %v559_v45 = vld [vmem:[%s1644_s5 + $0x8] sm:$0xff]  ;;  %v707_v46 = vld [vmem:[#allocation4 + $0x140] sm:$0xff] }
  0xae   :  { %811 = vmatpush.msrb.mxu1 %v682_v48  ;;  %v210_v48 = vpop.f32.mrf.mxu0  ;;  %823 = vmatpush.msra.mxu3 %v754_v44 }
  0xaf   :  { %632 = vmatpush.msrb.mxu2 %v583_v49  ;;  %613 = vmatpush.msra.mxu0 %v566_v50  ;;  %v751_v49 = vld [vmem:[#allocation4 + $0x2a0] sm:$0xff]  ;;  %v211_v50 = vadd.f32 %v210_v48, %v101_v42  ;;  %v761_v42 = vld [vmem:[#allocation4 + $0x2f0] sm:$0xff] }
  0xb0   :  { %812 = vmatpush.msrb.mxu1 %v679_v52  ;;  %v723_v52 = vld [vmem:[#allocation4 + $0x1c0] sm:$0xff]  ;;  %824 = vmatpush.msra.mxu3 %v751_v49 }
  0xb1   :  { %633 = vmatpush.msrb.mxu2 %v582_v53  ;;  %614 = vmatpush.msra.mxu0 %v565_v55  ;;  %v748_v53 = vld [vmem:[#allocation4 + $0x288] sm:$0xff]  ;;  %v701_v55 = vld [vmem:[#allocation4 + $0x110] sm:$0xff]  ;;  %v755_v49 = vld [vmem:[#allocation4 + $0x2c0] sm:$0xff] }
  0xb2   :  { %813 = vmatpush.msrb.mxu1 %v676_v57  ;;  %825 = vmatpush.msra.mxu3 %v748_v53  ;;  %v745_v57 = vld [vmem:[#allocation4 + $0x270] sm:$0xff] }
  0xb3   :  { %634 = vmatpush.msrb.mxu2 %v581_v59  ;;  %615 = vmatpush.msra.mxu0 %v564_v60  ;;  %v1495_v59 = vmax.f32 %v211_v50, 0.0  ;;  %v698_v60 = vld [vmem:[#allocation4 + $0xf8] sm:$0xff] }
  0xb4   :  { %814 = vmatpush.msrb.mxu1 %v673_v62  ;;  %826 = vmatpush.msra.mxu3 %v745_v57  ;;  %v742_v62 = vld [vmem:[#allocation4 + $0x258] sm:$0xff] }
  0xb5   :  { %635 = vmatpush.msrb.mxu2 %v580_v63  ;;  %616 = vmatpush.msra.mxu0 %v563_v1  ;;  %v772_v63 = vld [vmem:[#allocation4 + $0x348] sm:$0xff]  ;;  %v739_v1 = vld [vmem:[#allocation4 + $0x240] sm:$0xff]  ;;  %v714_v57 = vld [vmem:[#allocation4 + $0x178] sm:$0xff] }
  0xb6   :  { %815 = vmatpush.msrb.mxu1 %v670_v3  ;;  %827 = vmatpush.msra.mxu3 %v742_v62  ;;  %v692_v3 = vld [vmem:[#allocation4 + $0xc8] sm:$0xff]  ;;  %v711_v62 = vld [vmem:[#allocation4 + $0x160] sm:$0xff] }
  0xb7   :  { %636 = vmatpush.msrb.mxu2 %v579_v4  ;;  %617 = vmatpush.msra.mxu0 %v562_v31  ;;  %v736_v4 = vld [vmem:[#allocation4 + $0x228] sm:$0xff] }
  0xb8   :  { %816 = vmatpush.msrb.mxu1 %v667_v6  ;;  %828 = vmatpush.msra.mxu3 %v739_v1  ;;  %v766_v6 = vld [vmem:[#allocation4 + $0x318] sm:$0xff]  ;;  %v771_v1 = vld [vmem:[#allocation4 + $0x340] sm:$0xff] }
  0xb9   :  { %637 = vmatpush.msrb.mxu2 %v578_v7  ;;  %817 = vmatmul.f32.vlgmr.msrb.gmra.mxu1 %v1454_v10  ;;  %v689_v7 = vld [vmem:[#allocation4 + $0xb0] sm:$0xff] }
  0xba   :  { %1121 = vmatpush.msk.msra.mxu1 %vm365_vm1, %v779_v8  ;;  %618 = vmatpush.msra.mxu0 %v561_v36  ;;  %v733_v8 = vld [vmem:[#allocation4 + $0x210] sm:$0xff] }
  0xbb   :  { %638 = vmatpush.msrb.mxu2 %v577_v11  ;;  %829 = vmatpush.msra.mxu3 %v736_v4  ;;  %v763_v11 = vld [vmem:[#allocation4 + $0x300] sm:$0xff]  ;;  %v768_v4 = vld [vmem:[#allocation4 + $0x328] sm:$0xff] }
  0xbc   :  { %912 = vmatpush.msra.mxu1 %v776_v12  ;;  %619 = vmatpush.msra.mxu0 %v560_v40  ;;  %v686_v12 = vld [vmem:[#allocation4 + $0x98] sm:$0xff] }
  0xbd   :  { %639 = vmatpush.msrb.mxu2 %v576_v14  ;;  %830 = vmatpush.msra.mxu3 %v733_v8  ;;  %v683_v14 = vld [vmem:[#allocation4 + $0x80] sm:$0xff]  ;;  %v765_v8 = vld [vmem:[#allocation4 + $0x310] sm:$0xff] }
  0xbe   :  { %913 = vmatpush.msra.mxu1 %v773_v9  ;;  %620 = vmatpush.msra.mxu0 %v559_v45  ;;  %v727_v9 = vld [vmem:[#allocation4 + $0x1e0] sm:$0xff] }
  0xbf   :  { %640 = vmatpush.msrb.mxu2 %v575_v16  ;;  %831 = vmatpush.msra.mxu3 %v730_v13  ;;  %v724_v16 = vld [vmem:[#allocation4 + $0x1c8] sm:$0xff]  ;;  %v725_v13 = vld [vmem:[#allocation4 + $0x1d0] sm:$0xff] }
  0xc0   :  { %914 = vmatpush.msra.mxu1 %v770_v17  ;;  %621 = vmatpush.msra.mxu0 %v558_v5  ;;  %v677_v17 = vld [vmem:[#allocation4 + $0x50] sm:$0xff]  ;;  %v752_v5 = vld [vmem:[#allocation4 + $0x2a8] sm:$0xff] }
  0xc1   :  { %641 = vmatpush.msrb.mxu2 %v574_v34  ;;  %832 = vmatpush.msra.mxu3 %v727_v9  ;;  %v722_v9 = vld [vmem:[#allocation4 + $0x1b8] sm:$0xff] }
  0xc2   :  { %915 = vmatpush.msra.mxu1 %v767_v19  ;;  %1119 = vmatpush.msk.msrb.mxu0 %vm365_vm1, %v778_v54  ;;  %v674_v19 = vld [vmem:[#allocation4 + $0x38] sm:$0xff] }
  0xc3   :  { %861 = vmatpush.msra.mxu2 %v713_v37  ;;  %833 = vmatpush.msra.mxu3 %v724_v16  ;;  %v746_v54 = vld [vmem:[#allocation4 + $0x278] sm:$0xff]  ;;  %v719_v16 = vld [vmem:[#allocation4 + $0x1a0] sm:$0xff] }
  0xc4   :  { %916 = vmatpush.msra.mxu1 %v764_v20  ;;  %852 = vmatpush.msrb.mxu0 %v775_v58  ;;  %v718_v20 = vld [vmem:[#allocation4 + $0x198] sm:$0xff] }
  0xc5   :  { %1122 = vmatmul.msk.f32.vlgmr.msra.gmra.mxu1 %vm361_vm2, %v1468_v22  ;;  %862 = vmatpush.msra.mxu2 %v710_v41 }
  0xc6   :  { %941 = vmatpush.msrb.mxu1 %v762_v21  ;;  %853 = vmatpush.msrb.mxu0 %v772_v63  ;;  %v671_v21 = vld [vmem:[#allocation4 + $0x20] sm:$0xff]  ;;  %v737_v63 = vld [vmem:[#allocation4 + $0x230] sm:$0xff] }
  0xc7   :  { %863 = vmatpush.msra.mxu2 %v707_v46  ;;  %834 = vmatpush.msra.mxu3 %v721_v18  ;;  %v758_v46 = vld [vmem:[#allocation4 + $0x2d8] sm:$0xff]  ;;  %v716_v18 = vld [vmem:[#allocation4 + $0x188] sm:$0xff] }
  0xc8   :  { %942 = vmatpush.msrb.mxu1 %v759_v23  ;;  %854 = vmatpush.msrb.mxu0 %v769_v2  ;;  %v715_v23 = vld [vmem:[#allocation4 + $0x180] sm:$0xff]  ;;  %v734_v2 = vld [vmem:[#allocation4 + $0x218] sm:$0xff] }
  0xc9   :  { %864 = vmatpush.msra.mxu2 %v704_v51  ;;  %835 = vmatpush.msra.mxu3 %v718_v20  ;;  %v749_v51 = vld [vmem:[#allocation4 + $0x290] sm:$0xff]  ;;  %v684_v20 = vld [vmem:[#allocation4 + $0x88] sm:$0xff] }
  0xca   :  { %943 = vmatpush.msrb.mxu1 %v756_v24  ;;  %855 = vmatpush.msrb.mxu0 %v766_v6  ;;  %v668_v24 = vld [vmem:[#allocation4 + $0x8] sm:$0xff]  ;;  %v731_v6 = vld [vmem:[#allocation4 + $0x200] sm:$0xff] }
  0xcb   :  { %865 = vmatpush.msra.mxu2 %v701_v55  ;;  %836 = vmatpush.msra.mxu3 %v715_v23  ;;  %v777_v55 = vld [vmem:[#allocation4 + $0x370] sm:$0xff]  ;;  %v675_v23 = vld [vmem:[#allocation4 + $0x40] sm:$0xff] }
  0xcc   :  { %944 = vmatpush.msrb.mxu1 %v753_v25  ;;  %856 = vmatpush.msrb.mxu0 %v763_v11  ;;  %v353_v25 = vld [vmem:[%s1643_s4] sm:$0x7]  ;;  %v728_v11 = vld [vmem:[#allocation4 + $0x1e8] sm:$0xff] }
  0xcd   :  { %866 = vmatpush.msra.mxu2 %v698_v60  ;;  %v357_v35 = vperm.slane %v353_v25, 2  ;;  %v774_v60 = vld [vmem:[#allocation4 + $0x358] sm:$0xff] }
  0xce   :  { %945 = vmatpush.msrb.mxu1 %v750_v26  ;;  %v355_v26 = vperm.slane %v353_v25, 0 }
  0xcf   :  { %867 = vmatpush.msra.mxu2 %v695_v0  ;;  %v708_v0 = vld [vmem:[#allocation4 + $0x148] sm:$0xff] }
  0xd0   :  { %946 = vmatpush.msrb.mxu1 %v747_v27 }
  0xd1   :  { %868 = vmatpush.msra.mxu2 %v692_v3  ;;  %v705_v3 = vld [vmem:[#allocation4 + $0x130] sm:$0xff] }
  0xd2   :  { %947 = vmatpush.msrb.mxu1 %v744_v28 }
  0xd3   :  { %869 = vmatpush.msra.mxu2 %v689_v7  ;;  %v702_v7 = vld [vmem:[#allocation4 + $0x118] sm:$0xff] }
  0xd4   :  { %948 = vmatpush.msrb.mxu1 %v741_v29 }
  0xd5   :  { %870 = vmatpush.msra.mxu2 %v686_v12  ;;  %v699_v12 = vld [vmem:[#allocation4 + $0x100] sm:$0xff] }
  0xd6   :  { %949 = vmatpush.msrb.mxu1 %v738_v30 }
  0xd7   :  { %871 = vmatpush.msra.mxu2 %v683_v14  ;;  %v696_v14 = vld [vmem:[#allocation4 + $0xe8] sm:$0xff] }
  0xd8   :  { %950 = vmatpush.msrb.mxu1 %v735_v33  ;;  %v356_v33 = vperm.slane %v353_v25, 1  ;;  %v669_v25 = vld [vmem:[#allocation4 + $0x10] sm:$0xff] }
  0xd9   :  { %872 = vmatpush.msra.mxu2 %v680_v15  ;;  %v693_v15 = vld [vmem:[#allocation4 + $0xd0] sm:$0xff] }
  0xda   :  { %951 = vmatpush.msrb.mxu1 %v732_v38 }
  0xdb   :  { %873 = vmatpush.msra.mxu2 %v677_v17  ;;  %v690_v17 = vld [vmem:[#allocation4 + $0xb8] sm:$0xff] }
  0xdc   :  { %952 = vmatpush.msrb.mxu1 %v729_v43 }
  0xdd   :  { %874 = vmatpush.msra.mxu2 %v674_v19  ;;  %v687_v19 = vld [vmem:[#allocation4 + $0xa0] sm:$0xff] }
  0xde   :  { %953 = vmatpush.msrb.mxu1 %v726_v47 }
  0xdf   :  { %875 = vmatpush.msra.mxu2 %v671_v21  ;;  %v681_v21 = vld [vmem:[#allocation4 + $0x70] sm:$0xff] }
  0xe0   :  { %954 = vmatpush.msrb.mxu1 %v723_v52  ;;  %v780_v52 = vld [vmem:[#allocation4 + $0x388] sm:$0xf] }
  0xe1   :  { %876 = vmatpush.msra.mxu2 %v668_v24  ;;  %v672_v24 = vld [vmem:[#allocation4 + $0x28] sm:$0xff] }
  0xe2   :  { %955 = vmatpush.msrb.mxu1 %v720_v56  ;;  %v743_v56 = vld [vmem:[#allocation4 + $0x260] sm:$0xff] }
  0xe4   :  { %956 = vmatpush.msrb.mxu1 %v717_v61  ;;  %v740_v61 = vld [vmem:[#allocation4 + $0x248] sm:$0xff] }
  0xe5   :  { %957 = vmatmul.f32.vlgmr.msrb.gmra.mxu1 %v1495_v59 }
 0x113   :  { %v452_v32 = vpop.f32.mrf.mxu1 }
 0x114   :  { %v453_v37 = vadd.f32 %v452_v32, %v356_v33  ;;  %v994_v32 = vld [vmem:[%s1648_s9 + $0x50] sm:$0xff]  ;;  %v1012_v33 = vld [vmem:[%s1648_s9 + $0xe0] sm:$0xff] }
 0x118   :  { %v392_v27 = vpop.f32.mrf.mxu2  ;;  %v412_v28 = vpop.f32.mrf.mxu3 }
 0x119   :  { %v393_v29 = vadd.f32 %v392_v27, %v355_v26  ;;  %v999_v26 = vld [vmem:[%s1648_s9 + $0x78] sm:$0xff] }
 0x11a   :  { %v432_v30 = vpop.f32.mrf.mxu0  ;;  %v1015_v27 = vld [vmem:[%s1648_s9 + $0xf8] sm:$0xff] }
 0x11b   :  { %v413_v31 = vadd.f32 %v412_v28, %v393_v29  ;;  %v532_v45 = vpop.f32.mrf.mxu1  ;;  %v997_v28 = vld [vmem:[%s1648_s9 + $0x68] sm:$0xff]  ;;  %v1014_v29 = vld [vmem:[%s1648_s9 + $0xf0] sm:$0xff] }
 0x11d   :  { %v433_v34 = vadd.f32 %v432_v30, %v413_v31  ;;  %v995_v30 = vld [vmem:[%s1648_s9 + $0x58] sm:$0xff]  ;;  %v1013_v31 = vld [vmem:[%s1648_s9 + $0xe8] sm:$0xff] }
 0x11f   :  { %1134 = vtanh.f32 %v433_v34  ;;  %v993_v34 = vld [vmem:[%s1648_s9 + $0x48] sm:$0xff] }
 0x120   :  { %v492_v36 = vpop.f32.mrf.mxu2 }
 0x121   :  { %v512_v38 = vpop.f32.mrf.mxu3 }
 0x122   :  { %v472_v39 = vpop.f32.mrf.mxu0  ;;  %v513_v40 = vadd.f32 %v512_v38, %v357_v35  ;;  %v1011_v35 = vld [vmem:[%s1648_s9 + $0xd8] sm:$0xff] }
 0x123   :  { %v473_v41 = vadd.f32 %v472_v39, %v453_v37  ;;  %v1010_v37 = vld [vmem:[%s1648_s9 + $0xd0] sm:$0xff]  ;;  %v991_v38 = vld [vmem:[%s1648_s9 + $0x38] sm:$0xff]  ;;  %v1009_v39 = vld [vmem:[%s1648_s9 + $0xc8] sm:$0xff] }
 0x124   :  { %v533_v47 = vadd.f32 %v532_v45, %v513_v40  ;;  %v990_v40 = vld [vmem:[%s1648_s9 + $0x30] sm:$0xff] }
 0x125   :  { %v1135_v43 = vpop.eup %1134  ;;  %v493_v44 = vadd.f32 %v492_v36, %v473_v41  ;;  %v992_v36 = vld [vmem:[%s1648_s9 + $0x40] sm:$0xff]  ;;  %v1006_v45 = vld [vmem:[%s1648_s9 + $0xb0] sm:$0xff] }
 0x126   :  { %622 = vmatmul.f32.vlgmr.msra.gmra.mxu0 %v1135_v43  ;;  %v1008_v41 = vld [vmem:[%s1648_s9 + $0xc0] sm:$0xff]  ;;  %v1007_v43 = vld [vmem:[%s1648_s9 + $0xb8] sm:$0xff] }
 0x127   :  { %1136 = vtanh.f32 %v493_v44  ;;  %881 = vmatpush.msra.mxu0 %v761_v42  ;;  %v989_v42 = vld [vmem:[%s1648_s9 + $0x28] sm:$0xff]  ;;  %v988_v44 = vld [vmem:[%s1648_s9 + $0x20] sm:$0xff] }
 0x129   :  { %v552_v48 = vpop.f32.mrf.mxu2  ;;  %882 = vmatpush.msra.mxu0 %v758_v46  ;;  %v987_v46 = vld [vmem:[%s1648_s9 + $0x18] sm:$0xff] }
 0x12a   :  { %v553_v50 = vadd.f32 %v552_v48, %v533_v47  ;;  %v1005_v47 = vld [vmem:[%s1648_s9 + $0xa8] sm:$0xff]  ;;  %v986_v48 = vld [vmem:[%s1648_s9 + $0x10] sm:$0xff] }
 0x12b   :  { %883 = vmatpush.msra.mxu0 %v755_v49  ;;  %v1004_v49 = vld [vmem:[%s1648_s9 + $0xa0] sm:$0xff] }
 0x12c   :  { %1138 = vtanh.f32 %v553_v50  ;;  %v985_v50 = vld [vmem:[%s1648_s9 + $0x8] sm:$0xff] }
 0x12d   :  { %v1137_v53 = vpop.eup %1136  ;;  %884 = vmatpush.msra.mxu0 %v752_v5  ;;  %v1003_v5 = vld [vmem:[%s1648_s9 + $0x98] sm:$0xff] }
 0x12e   :  { %642 = vmatmul.f32.vlgmr.msrb.gmra.mxu2 %v1137_v53  ;;  %1120 = vmatmul.msk.f32.vlgmr.msrb.gmra.mxu0 %vm361_vm2, %v1468_v22  ;;  %v1001_v53 = vld [vmem:[%s1648_s9 + $0x88] sm:$0xff] }
 0x12f   :  { %885 = vmatpush.msra.mxu0 %v749_v51  ;;  %1123 = vmatpush.msk.msrb.mxu2 %vm365_vm1, %v780_v52  ;;  %v984_v51 = vld [vmem:[%s1648_s9] sm:$0xff]  ;;  %v1002_v52 = vld [vmem:[%s1648_s9 + $0x90] sm:$0xff] }
 0x131   :  { %886 = vmatpush.msra.mxu0 %v746_v54  ;;  %972 = vmatpush.msrb.mxu2 %v777_v55  ;;  %v1000_v54 = vld [vmem:[%s1648_s9 + $0x80] sm:$0xff]  ;;  %v1021_v55 = vld [vmem:[%s1648_s9 + $0x128] sm:$0xf] }
 0x132   :  { %v1139_v58 = vpop.eup %1138 }
 0x133   :  { %1118 = vmatmul.msk.f32.vlgmr.msrb.gmra.mxu3 %vm361_vm2, %v1139_v58  ;;  %887 = vmatpush.msra.mxu0 %v743_v56  ;;  %v1132_v56 = vld [vmem:[%s1645_s6] ss:$0 sm:$0xff] }
 0x134   :  { %921 = vmatpush.msrb.mxu3 %v714_v57  ;;  %973 = vmatpush.msrb.mxu2 %v774_v60 }
 0x135   :  { %888 = vmatpush.msra.mxu0 %v740_v61 }
 0x136   :  { %922 = vmatpush.msrb.mxu3 %v711_v62  ;;  %877 = vmatmul.f32.vlgmr.msra.gmra.mxu2 %v1454_v10  ;;  %v1020_v62 = vld [vmem:[%s1648_s9 + $0x120] sm:$0xff] }
 0x137   :  { %889 = vmatpush.msra.mxu0 %v737_v63  ;;  %974 = vmatpush.msrb.mxu2 %v771_v1  ;;  %v781_v63 = vld [vmem:[%s1647_s8] sm:$0x7] }
 0x138   :  { %923 = vmatpush.msrb.mxu3 %v708_v0 }
 0x139   :  { %890 = vmatpush.msra.mxu0 %v734_v2  ;;  %975 = vmatpush.msrb.mxu2 %v768_v4  ;;  %v1019_v2 = vld [vmem:[%s1648_s9 + $0x118] sm:$0xff]  ;;  %v1018_v4 = vld [vmem:[%s1648_s9 + $0x110] sm:$0xff] }
 0x13a   :  { %924 = vmatpush.msrb.mxu3 %v705_v3  ;;  %v783_v3 = vperm.slane %v781_v63, 0 }
 0x13b   :  { %837 = vmatmul.f32.vlgmr.msra.gmra.mxu3 %v1495_v59  ;;  %891 = vmatpush.msra.mxu0 %v731_v6  ;;  %v1017_v6 = vld [vmem:[%s1648_s9 + $0x108] sm:$0xff] }
 0x13c   :  { %925 = vmatpush.msrb.mxu3 %v702_v7  ;;  %976 = vmatpush.msrb.mxu2 %v765_v8  ;;  %v818_v7 = vpop.f32.mrf.mxu1 }
 0x13d   :  { %892 = vmatpush.msra.mxu0 %v728_v11  ;;  %v819_v11 = vadd.f32 %v818_v7, %v783_v3 }
 0x13e   :  { %926 = vmatpush.msrb.mxu3 %v699_v12  ;;  %1124 = vmatmul.msk.f32.vlgmr.msrb.gmra.mxu2 %vm361_vm2, %v1468_v22  ;;  %v678_v22 = vld [vmem:[#allocation4 + $0x58] sm:$0xff]  ;;  %v1016_v12 = vld [vmem:[%s1648_s9 + $0x100] sm:$0xff] }
 0x13f   :  { %893 = vmatpush.msra.mxu0 %v725_v13  ;;  %1052 = vmatpush.msra.mxu2 %v1015_v27 }
 0x140   :  { %927 = vmatpush.msrb.mxu3 %v696_v14  ;;  %v784_v14 = vperm.slane %v781_v63, 1 }
 0x141   :  { %894 = vmatpush.msra.mxu0 %v722_v9  ;;  %1053 = vmatpush.msra.mxu2 %v1014_v29 }
 0x142   :  { %928 = vmatpush.msrb.mxu3 %v693_v15 }
 0x143   :  { %895 = vmatpush.msra.mxu0 %v719_v16  ;;  %1054 = vmatpush.msra.mxu2 %v1013_v31 }
 0x144   :  { %929 = vmatpush.msrb.mxu3 %v690_v17 }
 0x145   :  { %896 = vmatpush.msra.mxu0 %v716_v18  ;;  %1055 = vmatpush.msra.mxu2 %v1012_v33 }
 0x146   :  { %930 = vmatpush.msrb.mxu3 %v687_v19  ;;  %897 = vmatmul.f32.vlgmr.msra.gmra.mxu0 %v1495_v59  ;;  %v998_v59 = vld [vmem:[%s1648_s9 + $0x70] sm:$0xff] }
 0x147   :  { %1032 = vmatpush.msrb.mxu0 %v999_v26  ;;  %1056 = vmatpush.msra.mxu2 %v1011_v35 }
 0x148   :  { %931 = vmatpush.msrb.mxu3 %v684_v20 }
 0x149   :  { %1033 = vmatpush.msrb.mxu0 %v998_v59  ;;  %1057 = vmatpush.msra.mxu2 %v1010_v37 }
 0x14a   :  { %932 = vmatpush.msrb.mxu3 %v681_v21  ;;  %v918_v21 = vpop.f32.mrf.mxu1 }
 0x14b   :  { %1034 = vmatpush.msrb.mxu0 %v997_v28  ;;  %1058 = vmatpush.msra.mxu2 %v1009_v39 }
 0x14c   :  { %933 = vmatpush.msrb.mxu3 %v678_v22 }
 0x14d   :  { %1059 = vmatpush.msra.mxu2 %v1008_v41 }
 0x14e   :  { %934 = vmatpush.msrb.mxu3 %v675_v23 }
 0x14f   :  { %1060 = vmatpush.msra.mxu2 %v1007_v43 }
 0x150   :  { %935 = vmatpush.msrb.mxu3 %v672_v24  ;;  %v785_v24 = vperm.slane %v781_v63, 2 }
 0x151   :  { %1061 = vmatpush.msra.mxu2 %v1006_v45 }
 0x152   :  { %936 = vmatpush.msrb.mxu3 %v669_v25 }
 0x153   :  { %937 = vmatmul.f32.vlgmr.msrb.gmra.mxu3 %v1454_v10  ;;  %v996_v10 = vld [vmem:[%s1648_s9 + $0x60] sm:$0xff]  ;;  %1062 = vmatpush.msra.mxu2 %v1005_v47 }
 0x154   :  { %1035 = vmatpush.msrb.mxu0 %v996_v10  ;;  %1125 = vmatpush.msk.msra.mxu3 %vm365_vm1, %v1021_v55 }
 0x155   :  { %1063 = vmatpush.msra.mxu2 %v1004_v49 }
 0x156   :  { %1036 = vmatpush.msrb.mxu0 %v995_v30  ;;  %1083 = vmatpush.msra.mxu3 %v1020_v62  ;;  %v1133_v30 = vld [vmem:[%s1649_s10] ss:$0 sm:$0xff] }
 0x157   :  { %1064 = vmatpush.msra.mxu2 %v1003_v5 }
 0x158   :  { %1037 = vmatpush.msrb.mxu0 %v994_v32  ;;  %1084 = vmatpush.msra.mxu3 %v1019_v2 }
 0x159   :  { %1065 = vmatpush.msra.mxu2 %v1002_v52 }
 0x15a   :  { %1038 = vmatpush.msrb.mxu0 %v993_v34  ;;  %1085 = vmatpush.msra.mxu3 %v1018_v4 }
 0x15b   :  { %1066 = vmatpush.msra.mxu2 %v1001_v53 }
 0x15c   :  { %1039 = vmatpush.msrb.mxu0 %v992_v36  ;;  %1086 = vmatpush.msra.mxu3 %v1017_v6 }
 0x15d   :  { %1067 = vmatpush.msra.mxu2 %v1000_v54 }
 0x15e   :  { %1040 = vmatpush.msrb.mxu0 %v991_v38  ;;  %1087 = vmatpush.msra.mxu3 %v1016_v12 }
 0x160   :  { %1041 = vmatpush.msrb.mxu0 %v990_v40 }
 0x162   :  { %1042 = vmatpush.msrb.mxu0 %v989_v42  ;;  %v958_v59 = vpop.f32.mrf.mxu1 }
 0x164   :  { %1043 = vmatpush.msrb.mxu0 %v988_v44 }
 0x166   :  { %1044 = vmatpush.msrb.mxu0 %v987_v46 }
 0x168   :  { %1045 = vmatpush.msrb.mxu0 %v986_v48 }
 0x16a   :  { %1046 = vmatpush.msrb.mxu0 %v985_v50 }
 0x16c   :  { %1047 = vmatpush.msrb.mxu0 %v984_v51 }
 0x1a3   :  { %v623_v57 = vpop.f32.mrf.mxu0 }
 0x1a4   :  { %v624_v58 = vadd.f32 %v1132_v56, %v623_v57 }
 0x1ab   :  { %v858_v8 = vpop.f32.mrf.mxu0 }
 0x1b1   :  { %v643_v60 = vpop.f32.mrf.mxu2 }
 0x1b2   :  { %v644_v61 = vadd.f32 %v643_v60, %v624_v58 }
 0x1b6   :  { %v663_v0 = vpop.f32.mrf.mxu3 }
 0x1b7   :  { %v664_v1 = vadd.f32 %v663_v0, %v644_v61 }
 0x1b9   :  { %v878_v15 = vpop.f32.mrf.mxu2  ;;  %1140 = vtanh.f32 %v664_v1 }
 0x1ba   :  { %v879_v17 = vadd.f32 %v878_v15, %v784_v14 }
 0x1be   :  { %v838_v13 = vpop.f32.mrf.mxu3 }
 0x1bf   :  { %v839_v9 = vadd.f32 %v838_v13, %v819_v11  ;;  %v1141_v37 = vpop.eup %1140 }
 0x1c1   :  { %v859_v16 = vadd.f32 %v858_v8, %v839_v9  ;;  %v978_v28 = vpop.f32.mrf.mxu2 }
 0x1c3   :  { %v981_v18 = vmax.f32 %v859_v16, 0.0  ;;  %v898_v19 = vpop.f32.mrf.mxu0 }
 0x1c4   :  { %v899_v20 = vadd.f32 %v898_v19, %v879_v17 }
 0x1c5   :  { %1048 = vmatmul.f32.vlgmr.msrb.gmra.mxu0 %v981_v18 }
 0x1c6   :  { %v919_v22 = vadd.f32 %v918_v21, %v899_v20 }
 0x1c8   :  { %v982_v23 = vmax.f32 %v919_v22, 0.0 }
 0x1ca   :  { %1068 = vmatmul.f32.vlgmr.msra.gmra.mxu2 %v982_v23 }
 0x1d6   :  { %v938_v25 = vpop.f32.mrf.mxu3 }
 0x1d7   :  { %v939_v26 = vadd.f32 %v938_v25, %v785_v24 }
 0x1d9   :  { %v959_v27 = vadd.f32 %v958_v59, %v939_v26 }
 0x1db   :  { %v979_v10 = vadd.f32 %v978_v28, %v959_v27 }
 0x1dd   :  { %v983_v29 = vmax.f32 %v979_v10, 0.0 }
 0x1df   :  { %1126 = vmatmul.msk.f32.vlgmr.msra.gmra.mxu3 %vm361_vm2, %v983_v29 }
 0x242   :  { %v1049_v31 = vpop.f32.mrf.mxu0 }
 0x243   :  { %v1050_v33 = vadd.f32 %v1133_v30, %v1049_v31 }
 0x24d   :  { %v1069_v32 = vpop.f32.mrf.mxu2 }
 0x24e   :  { %v1070_v34 = vadd.f32 %v1069_v32, %v1050_v33 }
 0x262   :  { %v1089_v35 = vpop.f32.mrf.mxu3 }
 0x263   :  { %v1090_v36 = vadd.f32 %v1089_v35, %v1070_v34 }
 0x265   :  { %1093 = vrot.lane.b32.xlu0 %v1090_v36, %s1198_s19 }
 0x2d7   :  { %v1094_v38 = vpop.permute.xlu0 %1093 }
 0x2d8   :  { %v1097_v39 = vsel %vm1096_vm3, %v1141_v37, %v1094_v38 }
 0x2d9   :  { %1098 = vst [vmem:[%s1650_s11] sm:$0xff] %v1097_v39 }
 0x2da   :  { %1103 = vsyncpa [#allocation3], 1 }
 0x2db   :  { %1104 = vsyncpa [#allocation5], 1 }

</bundles_post_ra>
